<compile_context>
chip_gen: v7x
topology: tpu7x:2x2x1
jax: 0.10.0
libtpu: 0.0.40
codegen_flags: <defaults>
</compile_context>

<pallas_src>
import jax
import jax.numpy as jnp
from jax import lax
from jax.experimental import pallas as pl
from jax.experimental.pallas import tpu as pltpu

_MIB = 1024 * 1024


def _vmem_budgets():
    """Return (resident tile budget, scoped vmem_limit cap), generation-aware."""
    try:
        cap = int(pltpu.get_tpu_info().vmem_capacity_bytes)
    except Exception:  # interpret mode / older runtime: be conservative (v7x-safe)
        cap = 64 * _MIB
    if cap >= 96 * _MIB:           # v5e / v6e: 128 MiB physical VMEM
        return 48 * _MIB, 100 * _MIB
    return 24 * _MIB, 48 * _MIB    # v7x: 64 MiB per TensorCore — leave headroom


def _pick_block(dim: int, cap: int, aligns) -> int:
    """Largest divisor of `dim` <= cap that is a multiple of one of `aligns`
    (tried in priority order). Returns the full dim when dim <= cap or when no
    aligned divisor exists (full-extent blocks are always layout-legal)."""
    if dim <= cap:
        return dim
    for align in aligns:
        start = cap - (cap % align)
        for cand in range(start, 0, -align):
            if dim % cand == 0:
                return cand
    # TODO(synk): full-dim fallback for awkward dims can exceed the VMEM budget.
    return dim


def _pick_batch_block(n: int, cap: int) -> int:
    cap = max(1, min(n, cap))
    for cand in range(cap, 0, -1):
        if n % cand == 0:
            return cand
    return 1


def _make_kernel(bn: int, c_tiled: bool, use_scratch: bool, lhs_t: bool,
                 compute_dtype):
    # LHS tile is (bt, bc) when transposed (contract dim 1), else (bc, bt)
    # (contract dim 0); RHS tile is always (bc, bp) (contract dim 0).
    dims = (((1,), (0,)), ((), ())) if lhs_t else (((0,), (0,)), ((), ()))

    def partials(x_ref, y_ref):
        parts = []
        for b in range(bn):
            xb = x_ref[b]
            yb = y_ref[b]
            if compute_dtype is not None:
                xb = xb.astype(compute_dtype)
                yb = yb.astype(compute_dtype)
            parts.append(lax.dot_general(
                xb, yb, dimension_numbers=dims,
                preferred_element_type=jnp.float32))
        return parts

    if not c_tiled:
        # Single C step per output tile: write straight to the output block.
        def kernel(x_ref, y_ref, o_ref):
            parts = partials(x_ref, y_ref)
            for b in range(bn):
                o_ref[b] = parts[b].astype(o_ref.dtype)
        return kernel

    if not use_scratch:
        # f32 output: accumulate directly into the C-resident output block.
        # First C step assigns (no zero-init pass), later steps add; no
        # separate finalize copy.
        def kernel(x_ref, y_ref, o_ref):
            kc = pl.program_id(3)
            parts = partials(x_ref, y_ref)

            @pl.when(kc == 0)
            def _first():
                for b in range(bn):
                    o_ref[b] = parts[b]

            @pl.when(kc > 0)
            def _accum():
                for b in range(bn):
                    o_ref[b] += parts[b]
        return kernel

    # Non-f32 output with a tiled C axis: keep an f32 scratch accumulator
    # (first step assigns instead of zero+add).
    def kernel(x_ref, y_ref, o_ref, acc_ref):
        kc = pl.program_id(3)
        parts = partials(x_ref, y_ref)

        @pl.when(kc == 0)
        def _first():
            for b in range(bn):
                acc_ref[b] = parts[b]

        @pl.when(kc > 0)
        def _accum():
            for b in range(bn):
                acc_ref[b] += parts[b]

        @pl.when(kc == pl.num_programs(3) - 1)
        def _finalize():
            o_ref[...] = acc_ref[...].astype(o_ref.dtype)

    return kernel


def einsum_net(
    x: jax.Array,
    y: jax.Array,
    *,
    compute_dtype=None,
    transpose_lhs=None,
    max_bn: int = 8,
    max_bt=None,
    max_bp=None,
    max_bc=None,
) -> jax.Array:
    """Pallas implementation of torch.einsum('nct,ncp->ntp', x, y)."""
    N, C, T = x.shape
    Ny, Cy, P = y.shape
    assert N == Ny and C == Cy, "batch/contraction dims must match"

    out_dtype = jnp.result_type(x.dtype, y.dtype)
    x_item = jnp.dtype(x.dtype).itemsize
    y_item = jnp.dtype(y.dtype).itemsize
    out_item = jnp.dtype(out_dtype).itemsize

    budget, vmem_cap = _vmem_budgets()

    auto_tp = max_bt is None and max_bp is None
    if max_bt is None:
        max_bt = 1024 if budget >= 48 * _MIB else 512
    if max_bp is None:
        max_bp = 1024 if budget >= 48 * _MIB else 512
    if max_bc is None:
        max_bc = 2048

    # Transpose the LHS once in the wrapper for MXU-bound shapes so the
    # in-kernel x tile is (bt, bc) with the contraction in lanes (no per-step
    # vxpose stealing vex slots from vmatmul). HBM-bound small-C shapes keep
    # the natural layout to avoid the extra HBM pass.
    if transpose_lhs is None:
        transpose_lhs = C >= 512 and T >= 256 and P >= 256

    # --- tile selection ------------------------------------------------------
    # bt / bp are lane dims somewhere -> multiples of 128; prefer 256 for the
    # v6e/v7x 2x256^2 MXU (256 is also a 128-multiple, so fine on v5e).
    bt = _pick_block(T, max_bt, (256, 128))
    bp = _pick_block(P, max_bp, (256, 128))
    # bc: sublane dim of both input blocks (natural layout) -> dtype-packed
    # alignment (8 f32, 16 bf16, 32 int8/fp8); lane dim of the x block when
    # transposed -> 128.
    sub_align = max(8, 32 // x_item, 32 // y_item)
    bc_align = 128 if transpose_lhs else sub_align
    bc = _pick_block(C, max_bc, (bc_align,))

    def resident(bn_, bt_, bp_, bc_, with_acc):
        r = bn_ * 2 * bc_ * bt_ * x_item        # double-buffered x tiles
        r += bn_ * 2 * bc_ * bp_ * y_item       # double-buffered y tiles
        r += bn_ * 2 * bt_ * bp_ * out_item     # double-buffered out tiles
        if with_acc:
            r += bn_ * bt_ * bp_ * 4            # f32 accumulator scratch
        return r

    # HBM-re-read-aware: when both T and P are tiled, x is re-streamed P//bp
    # times and y T//bt times. If the budget allows, make one full-extent —
    # whichever removes more HBM re-reads.
    if auto_tp and T > bt and P > bp:
        save_bp_full = (-(-P // bp) - 1) * N * C * T * x_item
        save_bt_full = (-(-T // bt) - 1) * N * C * P * y_item
        order = sorted([("bp", save_bp_full), ("bt", save_bt_full)],
                       key=lambda kv: kv[1], reverse=True)
        for which, _ in order:
            if which == "bp" and resident(1, bt, P, bc, True) <= budget:
                bp = P
                break
            if which == "bt" and resident(1, T, bp, bc, True) <= budget:
                bt = T
                break

    # v7x megacore: if N == 1 and T/P are untiled, split the larger output dim
    # so the "parallel" grid has at least 2 steps (no-op on v5e/v6e).
    if N == 1 and (T // bt) * (P // bp) == 1:
        if bp >= bt and bp % 256 == 0:
            bp //= 2
        elif bt % 256 == 0:
            bt //= 2

    # Batch blocking only pays for small tiles (amortizes ~0.35 us/step and
    # enlarges DMAs); big tiles already amortize it and the unrolled batch loop
    # just adds VMEM / live-range pressure.
    if bt * bp * out_item >= 1 * _MIB:
        bn = 1
    else:
        per_batch = resident(1, bt, bp, bc, True)
        bn_cap = min(N, max_bn, max(1, budget // max(1, per_batch)))
        # Keep the product of "parallel" grid extents >= 2 whenever N >= 2 so
        # both v7x TensorCores get work.
        if (T // bt) * (P // bp) == 1 and N >= 2:
            bn_cap = min(bn_cap, max(1, N // 2))
        bn = _pick_batch_block(N, bn_cap)

    n_c = C // bc
    c_tiled = n_c > 1
    # f32 output + tiled C: accumulate directly into the output block.
    use_scratch = c_tiled and out_dtype != jnp.float32

    x_in = jnp.swapaxes(x, 1, 2) if transpose_lhs else x  # (N,T,C) / (N,C,T)

    if c_tiled:
        grid = (N // bn, T // bt, P // bp, n_c)
        if transpose_lhs:
            x_spec = pl.BlockSpec((bn, bt, bc), lambda n, t, p, c: (n, t, c))
        else:
            x_spec = pl.BlockSpec((bn, bc, bt), lambda n, t, p, c: (n, c, t))
        y_spec = pl.BlockSpec((bn, bc, bp), lambda n, t, p, c: (n, c, p))
        o_spec = pl.BlockSpec((bn, bt, bp), lambda n, t, p, c: (n, t, p))
        semantics = ("parallel", "parallel", "parallel", "arbitrary")
    else:
        grid = (N // bn, T // bt, P // bp)
        if transpose_lhs:
            x_spec = pl.BlockSpec((bn, bt, bc), lambda n, t, p: (n, t, 0))
        else:
            x_spec = pl.BlockSpec((bn, bc, bt), lambda n, t, p: (n, 0, t))
        y_spec = pl.BlockSpec((bn, bc, bp), lambda n, t, p: (n, 0, p))
        o_spec = pl.BlockSpec((bn, bt, bp), lambda n, t, p: (n, t, p))
        semantics = ("parallel", "parallel", "parallel")

    scratch_shapes = (
        [pltpu.VMEM((bn, bt, bp), jnp.float32)] if use_scratch else [])

    resident_bytes = resident(bn, bt, bp, bc, use_scratch)
    vmem_limit = int(min(vmem_cap, max(32 * _MIB, 2 * resident_bytes)))

    # Advisory cost estimate including the HBM re-read factors.
    n_t, n_p = T // bt, P // bp
    cost = pl.CostEstimate(
        flops=2 * N * C * T * P,
        transcendentals=0,
        bytes_accessed=(x_item * N * C * T * n_p
                        + y_item * N * C * P * n_t
                        + out_item * N * T * P),
    )

    return pl.pallas_call(
        _make_kernel(bn, c_tiled, use_scratch, transpose_lhs, compute_dtype),
        out_shape=jax.ShapeDtypeStruct((N, T, P), out_dtype),
        grid_spec=pltpu.PrefetchScalarGridSpec(
            num_scalar_prefetch=0,
            grid=grid,
            in_specs=[x_spec, y_spec],
            out_specs=o_spec,
            scratch_shapes=scratch_shapes,
        ),
        compiler_params=pltpu.CompilerParams(
            dimension_semantics=semantics,
            vmem_limit_bytes=vmem_limit,
        ),
        cost_estimate=cost,
    )(x_in, y)


if __name__ == "__main__":
    key = jax.random.PRNGKey(0)
    k1, k2, k3, k4, k5, k6, k7, k8 = jax.random.split(key, 8)

    # 1) Primary small shape: natural layout, no C tiling, direct write.
    N, C, T, P = 2, 32, 128, 128
    x = jax.random.normal(k1, (N, C, T), dtype=jnp.float32)
    y = jax.random.normal(k2, (N, C, P), dtype=jnp.float32)
    out = jax.block_until_ready(einsum_net(x, y))
    ref = jnp.einsum("nct,ncp->ntp", x, y, precision="highest")
    assert out.shape == (N, T, P)
    assert jnp.allclose(out, ref, atol=1e-4, rtol=1e-4), "mismatch (f32 direct)"

    # 2) bf16 MXU-feed fast path (f32 accumulation): looser tolerance.
    out_bf = jax.block_until_ready(einsum_net(x, y, compute_dtype=jnp.bfloat16))
    assert jnp.allclose(out_bf, ref, atol=0.5, rtol=5e-2), "mismatch (bf16 feed)"

    # 3) Tiled T/P + tiled C with f32 output -> accumulate directly into o_ref.
    N2, C2, T2, P2 = 2, 64, 256, 256
    x2 = jax.random.normal(k3, (N2, C2, T2), dtype=jnp.float32)
    y2 = jax.random.normal(k4, (N2, C2, P2), dtype=jnp.float32)
    out2 = jax.block_until_ready(
        einsum_net(x2, y2, max_bn=1, max_bt=128, max_bp=128, max_bc=32))
    ref2 = jnp.einsum("nct,ncp->ntp", x2, y2, precision="highest")
    assert jnp.allclose(out2, ref2, atol=1e-3, rtol=1e-4), "mismatch (tiled C, f32)"

    # 4) Transposed-LHS MXU feed (compute-bound heuristic) with a tiled C axis.
    N3, C3, T3, P3 = 2, 512, 256, 256
    x3 = jax.random.normal(k5, (N3, C3, T3), dtype=jnp.float32)
    y3 = jax.random.normal(k6, (N3, C3, P3), dtype=jnp.float32)
    out3 = jax.block_until_ready(einsum_net(x3, y3, max_bc=256))
    ref3 = jnp.einsum("nct,ncp->ntp", x3, y3, precision="highest")
    assert jnp.allclose(out3, ref3, atol=1e-2, rtol=1e-4), "mismatch (transposed LHS)"

    # 5) bf16 inputs with tiled C -> f32 scratch accumulator path.
    xb = jax.random.normal(k7, (2, 64, 128), dtype=jnp.bfloat16)
    yb = jax.random.normal(k8, (2, 64, 128), dtype=jnp.bfloat16)
    outb = jax.block_until_ready(einsum_net(xb, yb, max_bc=32))
    refb = jnp.einsum("nct,ncp->ntp", xb.astype(jnp.float32),
                      yb.astype(jnp.float32), precision="highest")
    assert jnp.allclose(outb.astype(jnp.float32), refb, atol=0.5, rtol=5e-2), \
        "mismatch (bf16 inputs, scratch accumulator)"

    print("KERNEL_OK")
</pallas_src>

<mosaic_0001>
module attributes {stable_mosaic.version = 11 : i64} {
  func.func @kernel(%arg0: i32, %arg1: i32, %arg2: i32, %arg3: memref<1x32x128xf32, #tpu.memory_space<vmem>>, %arg4: memref<1x32x128xf32, #tpu.memory_space<vmem>>, %arg5: memref<1x128x128xf32, #tpu.memory_space<vmem>>) attributes {dimension_semantics = [#tpu.dimension_semantics<parallel>, #tpu.dimension_semantics<parallel>, #tpu.dimension_semantics<parallel>], iteration_bounds = array<i64: 2, 1, 1>, scalar_prefetch = 0 : i64, scratch_operands = 0 : i64, tpu.core_type = #tpu.core_type<tc>, window_params = [{transform_indices = @transform_0, window_bounds = array<i64: 1, 32, 128>}, {transform_indices = @transform_1, window_bounds = array<i64: 1, 32, 128>}, {transform_indices = @transform_2, window_bounds = array<i64: 1, 128, 128>}]} {
    %c0 = arith.constant 0 : index
    %c0_0 = arith.constant 0 : index
    %c0_1 = arith.constant 0 : index
    %0 = vector.load %arg3[%c0, %c0_0, %c0_1] : memref<1x32x128xf32, #tpu.memory_space<vmem>>, vector<1x32x128xf32>
    %1 = vector.shape_cast %0 : vector<1x32x128xf32> to vector<32x128xf32>
    %c0_2 = arith.constant 0 : index
    %c0_3 = arith.constant 0 : index
    %c0_4 = arith.constant 0 : index
    %2 = vector.load %arg4[%c0_2, %c0_3, %c0_4] : memref<1x32x128xf32, #tpu.memory_space<vmem>>, vector<1x32x128xf32>
    %3 = vector.shape_cast %2 : vector<1x32x128xf32> to vector<32x128xf32>
    %cst = arith.constant dense<0.000000e+00> : vector<128x128xf32>
    %4 = tpu.matmul %1, %3, %cst {dimension_numbers = #tpu.dot_dimension_numbers<[0], [0], [1], [1], [0, 1, 1, 1], [], []>} : vector<32x128xf32>, vector<32x128xf32>, vector<128x128xf32> -> vector<128x128xf32>
    %c0_5 = arith.constant 0 : index
    %c0_6 = arith.constant 0 : index
    %c0_7 = arith.constant 0 : index
    %5 = vector.load %arg5[%c0_5, %c0_6, %c0_7] : memref<1x128x128xf32, #tpu.memory_space<vmem>>, vector<1x128x128xf32>
    %6 = vector.shape_cast %5 : vector<1x128x128xf32> to vector<128x128xf32>
    %7 = vector.shape_cast %4 : vector<128x128xf32> to vector<1x128x128xf32>
    tpu.vector_store %arg5[%c0_5, %c0_6, %c0_7], %7 {strides = array<i32>} : memref<1x128x128xf32, #tpu.memory_space<vmem>>, vector<1x128x128xf32>,
    return
  }
  func.func @transform_0(%arg0: i32, %arg1: i32, %arg2: i32) -> (i32, i32, i32) {
    %c0_i32 = arith.constant 0 : i32
    %c0_i32_0 = arith.constant 0 : i32
    return %arg0, %c0_i32, %arg1 : i32, i32, i32
  }
  func.func @transform_1(%arg0: i32, %arg1: i32, %arg2: i32) -> (i32, i32, i32) {
    %c0_i32 = arith.constant 0 : i32
    %c0_i32_0 = arith.constant 0 : i32
    return %arg0, %c0_i32, %arg2 : i32, i32, i32
  }
  func.func @transform_2(%arg0: i32, %arg1: i32, %arg2: i32) -> (i32, i32, i32) {
    %c0_i32 = arith.constant 0 : i32
    return %arg0, %arg1, %arg2 : i32, i32, i32
  }
}

</mosaic_0001>

<bundles_post_ra>
// kernel: tpu_custom_call.1
= control target key start
LH: loop header
LB: loop body
LE: loop exit
PB: predicated region body
PF: predicated region fallthrough
CT: control target
= control target key end

     0   :  { %7 = vsyncpa [#allocation3], 0  ;;  %s1230_s0 = inlined_call_operand.hbm [shape: f32[2,32,128], index: 0, kind: input, shape index: {}]   ;;  %s1231_s1 = inlined_call_operand.hbm [shape: f32[2,32,128], index: 1, kind: input, shape index: {}]   ;;  %s1232_s2 = inlined_call_operand.hbm [shape: f32[2,128,128], index: 2, kind: output, shape index: {}]  }
   0x1   :  { %9 = vsyncpa [#allocation3 + $0x1], 0 }
   0x2   :  { %10 = vsyncpa [#allocation6], 0 }
   0x3   :  { %12 = vsyncpa [#allocation6 + $0x1], 0 }
   0x4   :  { %13 = vsyncpa [#allocation4], 0 }
   0x5   :  { %15 = vsyncpa [#allocation4 + $0x1], 0  ;;  %s958_s9 = smov 0   ;;  %s960_s10 = smov 0  }
   0x6   :  { %s962_s11 = smov 0   ;;  %s964_s12 = smov 0  }
   0x7   :  { %s966_s13 = smov 0   ;;  %s968_s14 = smov 0  }
   0x8 LB: > { %s614_s15 = sadd.s32 4294967295, %s934_s14   ;;  %s615_s16 = sadd.s32 4294967294, %s934_s14   ;;  %s934_s14 = sphi %s968_s14, %s21_s14   ;;  %s930_s13 = sphi %s966_s13, %s1250_s13   ;;  %s926_s12 = sphi %s964_s12, %s1249_s12   ;;  %s922_s11 = sphi %s962_s11, %s1248_s11   ;;  %s918_s10 = sphi %s960_s10, %s1247_s10   ;;  %s914_s9 = sphi %s958_s9, %s1246_s9  }
   0x9   : > { %s40_s17 = sadd.s32 1, %s930_s13  ;;  %s49_s18 = sadd.s32 1, %s922_s11 }
   0xa   : > { %p42_p0 = scmp.ge.s32.totalorder %s40_s17, 2  ;;  %p56_p1 = scmp.ne.s32.totalorder %s922_s11, %s918_s10 }
   0xb   : > { %p57_p2 = scmp.eq.s32.totalorder %s934_s14, 0  ;;  %p62_p3 = scmp.ne.s32.totalorder %s918_s10, %s914_s9 }
   0xc   : > { %s1252_s17 = smov (%p42_p0, %s40_s17), 0  ;;  %p63_p5 = scmp.eq.s32.totalorder %s614_s15, 0 }
   0xd   : > { %p999_p4 = por %p57_p2, %p56_p1  ;;  %s44_s20 = ssub.s32 %s930_s13, %s1252_s17 }
   0xe   : > { %p118_p6 = scmp.eq.s32.totalorder %s614_s15, 1  ;;  %p47_p7 = scmp.eq.s32.totalorder %s44_s20, 0 }
   0xf   : > { %p1005_p8 = por %p63_p5, %p62_p3  ;;  %p124_p10 = scmp.eq.s32.totalorder %s615_s16, 1 }
  0x10   : > { %p1009_p9 = por %p118_p6, %p56_p1  ;;  %p733_p13 = scmp.lt.s32.totalorder %s934_s14, 2 }
  0x11   : > { %s1236_s21 = scalar_select %p1005_p8, 1, 0 }
  0x12   : > { %s1237_s22 = scalar_select %p1009_p9, 1, 0 }
  0x13   : > { %s1014_s23 = scalar_select %p47_p7, %s922_s11, %s49_s18  }
  0x14   : > { %p1016_p11 = por %p124_p10, %p62_p3  ;;  %s1023_s25 = sand.u32 1, %s922_s11  }
  0x15   : > { %s618_s26 = sshll.u32 %s1023_s25, 5  ;;  %s649_s27 = sshll.u32 %s930_s13, 9 }
  0x16   : > { %s1238_s24 = scalar_select %p1016_p11, 1, 0 }
  0x17   : > { %s1032_s30 = scalar_lea.hbm %s1230_s0, %s649_s27  ;;  %s148_s3 = scalar_lea.vmem [#allocation2], %s618_s26 }
  0x18   : > { %s156_s4 = sshll.u32 %s148_s3, 4  ;;  %p1040_p0 = pnand %p733_p13, %p999_p4  ;;  %s1036_s4 = int_to_ptr.vmem [resolvable:$true] %s156_s4 }
  0x19   : > { %s145_s6 = scalar_lea.sflag [#allocation3], %s1023_s25  ;;  %s788_s7 = scalar_lea.hbm %s1032_s30, 512 }
  0x1a   : > { %p789_p2 = scmp.ne.s32.totalorder %s1032_s30, %s788_s7  ;;  %p790_p3 = pneg %p1040_p0 }
  0x1b   : > { %s793_s16 = scalar_lea.hbm %s1230_s0, 1024  ;;  %p794_p4 = scmp.lt.u32.totalorder %s1032_s30, %s1230_s0 }
  0x1c   : > { %p791_p5 = pnand %p790_p3, %p789_p2  ;;  %p795_p7 = scmp.lt.u32.totalorder %s793_s16, %s788_s7 }
  0x1d   : > { %p797_p13 = scmp.lt.u32.totalorder %s788_s7, %s1032_s30 }
  0x1e   : > { %p792_p6 = pneg %p791_p5  ;;  %p796_p10 = por %p795_p7, %p794_p4 }
  0x20   : > { %p798_p12 = por %p797_p13, %p796_p10 }
  0x22   : > { %p799_p1 = pnand %p798_p12, %p792_p6 }
  0x24   : > { %802 = shalt.err (!%p799_p1)
}
  0x25   : > { %s803_s20 = scalar_lea.vmem %s1036_s4, 512  ;;  %s936_s28 = smov [#allocation2]  }
  0x26   : > { %p804_p2 = scmp.ne.s32.totalorder %s1036_s4, %s803_s20  ;;  %s808_s29 = sshll.u32 %s936_s28, 4  ;;  %s809_s29 = int_to_ptr.vmem [resolvable:$false] %s808_s29 }
  0x27   : > { %s810_s3 = scalar_lea.vmem %s809_s29, 1024  ;;  %p811_p9 = scmp.lt.s32.totalorder %s1036_s4, %s809_s29 }
  0x28   : > { %p806_p5 = pnand %p804_p2, %p790_p3  ;;  %p812_p4 = scmp.lt.s32.totalorder %s810_s3, %s803_s20 }
  0x2a   : > { %p807_p11 = pneg %p806_p5  ;;  %p813_p7 = por %p812_p4, %p811_p9 }
  0x2c   : > { %p814_p10 = pnand %p813_p7, %p807_p11 }
  0x2e   : > { %817 = shalt.err (!%p814_p10)
}
  0x2f   : > { %s937_s7 = smov 128   ;;  %s938_s8 = smov 8  }
  0x30   : > { %725 = dma.hbm_to_vmem [thread:$0]  (!%p1040_p0), %s1032_s30, 512, %s1036_s4, %s145_s6, %s937_s7, %s937_s7, %s938_s8  }
  0x31   : > { %p186_p9 = scmp.lt.s32.totalorder %s934_s14, 3  ;;  %s1082_s18 = scalar_lea.hbm %s1231_s1, %s649_s27 }
  0x32   : > { %p1240_p11 = scmp.ge.s32.totalorder %s934_s14, 1  ;;  %s170_s20 = scalar_lea.vmem [#allocation5], %s618_s26 }
  0x33   : > { %s178_s28 = sshll.u32 %s170_s20, 4  ;;  %s167_s30 = scalar_lea.sflag [#allocation6], %s1023_s25  ;;  %s1092_s28 = int_to_ptr.vmem [resolvable:$true] %s178_s28 }
  0x34   : > { %p1086_p12 = pnand %p1240_p11, %p186_p9  ;;  %s818_s4 = scalar_lea.hbm %s1082_s18, 512 }
  0x35   : > { %p819_p1 = scmp.ne.s32.totalorder %s1082_s18, %s818_s4  ;;  %s823_s29 = scalar_lea.hbm %s1231_s1, 1024 }
  0x36   : > { %p824_p2 = scmp.lt.u32.totalorder %s1082_s18, %s1231_s1  ;;  %p825_p5 = scmp.lt.u32.totalorder %s823_s29, %s818_s4 }
  0x37   : > { %p821_p6 = pnand %p819_p1, %p790_p3  ;;  %p827_p7 = scmp.lt.u32.totalorder %s818_s4, %s1082_s18 }
  0x38   : > { %p826_p4 = por %p825_p5, %p824_p2 }
  0x39   : > { %p822_p13 = pneg %p821_p6 }
  0x3a   : > { %p828_p10 = por %p827_p7, %p826_p4 }
  0x3c   : > { %p829_p9 = pnand %p828_p10, %p822_p13 }
  0x3e   : > { %832 = shalt.err (!%p829_p9)
}
  0x3f   : > { %s833_s26 = scalar_lea.vmem %s1092_s28, 512  ;;  %s939_s16 = smov [#allocation5]  }
  0x40   : > { %p834_p11 = scmp.ne.s32.totalorder %s1092_s28, %s833_s26  ;;  %s838_s20 = sshll.u32 %s939_s16, 4  ;;  %s839_s20 = int_to_ptr.vmem [resolvable:$false] %s838_s20 }
  0x41   : > { %s840_s27 = scalar_lea.vmem %s839_s20, 1024  ;;  %p841_p8 = scmp.lt.s32.totalorder %s1092_s28, %s839_s20 }
  0x42   : > { %p836_p1 = pnand %p834_p11, %p790_p3  ;;  %p842_p2 = scmp.lt.s32.totalorder %s840_s27, %s833_s26 }
  0x44   : > { %p837_p6 = pneg %p836_p1  ;;  %p843_p5 = por %p842_p2, %p841_p8 }
  0x46   : > { %p844_p4 = pnand %p843_p5, %p837_p6 }
  0x48   : > { %847 = shalt.err (!%p844_p4)
}
  0x49   : > { %728 = dma.hbm_to_vmem [thread:$0]  (!%p1040_p0), %s1082_s18, 512, %s1092_s28, %s167_s30, %s937_s7, %s937_s7, %s938_s8  }
  0x4a   : > { %190 = sbr.rel (%p1086_p12) target bundleno = 502 (0x1f6), region = 28  ;;  %s1126_s4 = sand.u32 (!%p1086_p12), 1, %s918_s10  }
  0x4b   : > { %s625_s6 = sshll.u32 (!%p1086_p12), %s1126_s4, 5  ;;  %s193_s29 = scalar_lea.sflag (!%p1086_p12), [#allocation3], %s1126_s4 }
  0x4c   : > { %s196_s5 = scalar_lea.vmem (!%p1086_p12), [#allocation2], %s625_s6  ;;  %p1242_p8 = scmp.ne.s32.totalorder (!%p1086_p12), %s1236_s21, 0 }
  0x51   : > { %901 = dma.done.wait (%p1242_p8), %s193_s29, 512  }
  0x52   : > { %903 = vsyncadd (%p1242_p8), %s193_s29, 4294966784  ;;  %s202_s25 = scalar_lea.sflag [#allocation6], %s1126_s4  ;;  %s205_s7 = scalar_lea.vmem [#allocation5], %s625_s6 }
  0x53   : > { %905 = dma.done.wait (%p1242_p8), %s202_s25, 512  }
  0x54   : > { %907 = vsyncadd (%p1242_p8), %s202_s25, 4294966784  ;;  %v232_v0 = vld [vmem:[%s196_s5] sm:$0xff]  ;;  %v237_v2 = vld [vmem:[%s205_s7 + $0x8] sm:$0xff]  ;;  %vm272_vm0 = vcmask 261120   ;;  %s627_s21 = sshll.u32 %s1126_s4, 7  ;;  %s651_s18 = sshll.u32 %s926_s12, 11 }
  0x55   : > { %240 = vxpose.xlu0.b32.start [1/4] (short) %v232_v0, 128  ;;  %v236_v1 = vld [vmem:[%s205_s7] sm:$0xff]  ;;  %v233_v3 = vld [vmem:[%s196_s5 + $0x8] sm:$0xff]  ;;  %v238_v5 = vld [vmem:[%s205_s7 + $0x10] sm:$0xff]  ;;  %s1156_s8 = scalar_lea.vmem [#allocation7], %s627_s21  ;;  %s1177_s3 = scalar_lea.hbm %s1232_s2, %s651_s18 }
  0x56   : > { %v704_v4 = vpack.c.bf16 %v237_v2, %v236_v1  ;;  %v239_v6 = vld [vmem:[%s205_s7 + $0x18] sm:$0xff]  ;;  %v234_v8 = vld [vmem:[%s196_s5 + $0x10] sm:$0xff]  ;;  %s499_s19 = sshll.u32 %s1156_s8, 4  ;;  %s483_s15 = scalar_lea.sflag [#allocation4], %s1126_s4  ;;  %s1179_s19 = int_to_ptr.vmem [resolvable:$true] %s499_s19 }
  0x57   : > { %v708_v7 = vpack.c.bf16 %v239_v6, %v238_v5  ;;  %v235_v9 = vld [vmem:[%s196_s5 + $0x18] sm:$0xff]  ;;  %s848_s26 = scalar_lea.vmem %s1179_s19, 2048  ;;  %p1243_p3 = scmp.ne.s32.totalorder %s1237_s22, 0 }
  0x58   : > { %705 = vmatprep.subr.bf16.mxu0 %v704_v4  ;;  %712 = vmatprep.subr.bf16.mxu1 %v704_v4  ;;  %p849_p0 = scmp.ne.s32.totalorder %s1179_s19, %s848_s26  ;;  %s940_s12 = smov [#allocation7]  }
  0x59   : > { %241 = vxpose.xlu0.b32.cont [2/4] (short) %v233_v3, 128  ;;  %707 = vmatpush3.bf16.msra.mxu0 %v704_v4  ;;  %s852_s16 = sshll.u32 %s940_s12, 4  ;;  %s853_s16 = int_to_ptr.vmem [resolvable:$false] %s852_s16 }
  0x5a   : > { %709 = vmatprep.subr.bf16.mxu0 %v708_v7  ;;  %714 = vmatpush3.bf16.msra.mxu1 %v704_v4  ;;  %p850_p12 = pnand %p849_p0, %p1243_p3  ;;  %s854_s20 = scalar_lea.vmem %s853_s16, 4096 }
  0x5b   : > { %713 = vmatprep.subr.bf16.mxu1 %v708_v7  ;;  %p855_p7 = scmp.lt.s32.totalorder %s1179_s19, %s853_s16  ;;  %p856_p10 = scmp.lt.s32.totalorder %s854_s20, %s848_s26 }
  0x5c   : > { %p851_p13 = pneg %p850_p12 }
  0x5d   : > { %242 = vxpose.xlu0.b32.cont [3/4] (short) %v234_v8, 128  ;;  %711 = vmatpush3.bf16.msra.mxu0 %v708_v7  ;;  %p857_p9 = por %p856_p10, %p855_p7 }
  0x5e   : > { %715 = vmatpush3.bf16.msra.mxu1 %v708_v7 }
  0x5f   : > { %p858_p11 = pnand %p857_p9, %p851_p13 }
  0x61   : > { %243 = vxpose.xlu0.b32.end [4/4] (short) %v235_v9, 128 }
  0xd5   : > { %v256_v10 = vpop.trf.xlu0 }
  0xd6   : > { %680 = vmatprep.mubr.msk.f32.mxu0 %vm272_vm0, %v256_v10 }
  0xd9   : > { %v257_v11 = vpop.trf.xlu0 }
  0xda   : > { %681 = vmatmul.mubr.msk.f32.vlgmr.msra.gmra.mrb[0].mxu0 %vm272_vm0, %v257_v11 }
  0xdd   : > { %v258_v12 = vpop.trf.xlu0 }
  0xde   : > { %683 = vmatprep.mubr.msk.f32.mxu0 %vm272_vm0, %v258_v12 }
  0xe1   : > { %v259_v13 = vpop.trf.xlu0 }
  0xe2   : > { %684 = vmatmul.mubr.msk.f32.gmra.mrb[2].mxu0 %vm272_vm0, %v259_v13 }
  0xe5   : > { %v260_v14 = vpop.trf.xlu0 }
  0xe6   : > { %686 = vmatprep.mubr.msk.f32.mxu0 %vm272_vm0, %v260_v14 }
  0xe9   : > { %v261_v15 = vpop.trf.xlu0 }
  0xea   : > { %687 = vmatmul.mubr.msk.f32.gmra.mrb[4].mxu0 %vm272_vm0, %v261_v15 }
  0xed   : > { %v262_v16 = vpop.trf.xlu0 }
  0xee   : > { %689 = vmatprep.mubr.msk.f32.mxu0 %vm272_vm0, %v262_v16 }
  0xf1   : > { %v263_v17 = vpop.trf.xlu0 }
  0xf2   : > { %690 = vmatmul.mubr.msk.f32.gmra.mrb[6].mxu0 %vm272_vm0, %v263_v17 }
  0xf5   : > { %v264_v18 = vpop.trf.xlu0 }
  0xf6   : > { %692 = vmatprep.mubr.msk.f32.mxu1 %vm272_vm0, %v264_v18 }
  0xf9   : > { %v265_v19 = vpop.trf.xlu0 }
  0xfa   : > { %693 = vmatmul.mubr.msk.f32.vlgmr.msra.gmra.mrb[0].mxu1 %vm272_vm0, %v265_v19 }
  0xfd   : > { %v266_v20 = vpop.trf.xlu0 }
  0xfe   : > { %695 = vmatprep.mubr.msk.f32.mxu1 %vm272_vm0, %v266_v20 }
 0x101   : > { %v267_v21 = vpop.trf.xlu0 }
 0x102   : > { %696 = vmatmul.mubr.msk.f32.gmra.mrb[2].mxu1 %vm272_vm0, %v267_v21 }
 0x105   : > { %v268_v22 = vpop.trf.xlu0 }
 0x106   : > { %698 = vmatprep.mubr.msk.f32.mxu1 %vm272_vm0, %v268_v22 }
 0x109   : > { %v269_v23 = vpop.trf.xlu0 }
 0x10a   : > { %699 = vmatmul.mubr.msk.f32.gmra.mrb[4].mxu1 %vm272_vm0, %v269_v23 }
 0x10d   : > { %v270_v24 = vpop.trf.xlu0 }
 0x10e   : > { %701 = vmatprep.mubr.msk.f32.mxu1 %vm272_vm0, %v270_v24 }
 0x111   : > { %v271_v25 = vpop.trf.xlu0 }
 0x112   : > { %702 = vmatmul.mubr.msk.f32.gmra.mrb[6].mxu1 %vm272_vm0, %v271_v25 }
 0x1ad   : > { %v682_v26 = vpop.f32.mrb[0].mxu0 }
 0x1ae   : > { %467 = vst [vmem:[%s1156_s8 + $0x8] sm:$0xff] %v682_v26  ;;  %v387_v27 = vpop.f32.mrb[1].mxu0 }
 0x1af   : > { %466 = vst [vmem:[%s1156_s8] sm:$0xff] %v387_v27 }
 0x1b5   : > { %v685_v28 = vpop.f32.mrb[2].mxu0 }
 0x1b6   : > { %469 = vst [vmem:[%s1156_s8 + $0x18] sm:$0xff] %v685_v28  ;;  %v397_v29 = vpop.f32.mrb[3].mxu0 }
 0x1b7   : > { %468 = vst [vmem:[%s1156_s8 + $0x10] sm:$0xff] %v397_v29 }
 0x1bd   : > { %v688_v30 = vpop.f32.mrb[4].mxu0 }
 0x1be   : > { %471 = vst [vmem:[%s1156_s8 + $0x28] sm:$0xff] %v688_v30  ;;  %v407_v31 = vpop.f32.mrb[5].mxu0 }
 0x1bf   : > { %470 = vst [vmem:[%s1156_s8 + $0x20] sm:$0xff] %v407_v31 }
 0x1c5   : > { %v691_v32 = vpop.f32.mrb[6].mxu0 }
 0x1c6   : > { %473 = vst [vmem:[%s1156_s8 + $0x38] sm:$0xff] %v691_v32  ;;  %v417_v33 = vpop.f32.mrb[7].mxu0 }
 0x1c7   : > { %472 = vst [vmem:[%s1156_s8 + $0x30] sm:$0xff] %v417_v33 }
 0x1cd   : > { %v694_v34 = vpop.f32.mrb[0].mxu1 }
 0x1ce   : > { %475 = vst [vmem:[%s1156_s8 + $0x48] sm:$0xff] %v694_v34  ;;  %v427_v35 = vpop.f32.mrb[1].mxu1 }
 0x1cf   : > { %474 = vst [vmem:[%s1156_s8 + $0x40] sm:$0xff] %v427_v35 }
 0x1d5   : > { %v697_v36 = vpop.f32.mrb[2].mxu1 }
 0x1d6   : > { %477 = vst [vmem:[%s1156_s8 + $0x58] sm:$0xff] %v697_v36  ;;  %v437_v37 = vpop.f32.mrb[3].mxu1 }
 0x1d7   : > { %476 = vst [vmem:[%s1156_s8 + $0x50] sm:$0xff] %v437_v37 }
 0x1dd   : > { %v700_v38 = vpop.f32.mrb[4].mxu1 }
 0x1de   : > { %479 = vst [vmem:[%s1156_s8 + $0x68] sm:$0xff] %v700_v38  ;;  %v447_v39 = vpop.f32.mrb[5].mxu1 }
 0x1df   : > { %478 = vst [vmem:[%s1156_s8 + $0x60] sm:$0xff] %v447_v39 }
 0x1e5   : > { %v703_v40 = vpop.f32.mrb[6].mxu1 }
 0x1e6   : > { %481 = vst [vmem:[%s1156_s8 + $0x78] sm:$0xff] %v703_v40  ;;  %v457_v41 = vpop.f32.mrb[7].mxu1 }
 0x1e7   : > { %480 = vst [vmem:[%s1156_s8 + $0x70] sm:$0xff] %v457_v41 }
 0x1e8   : > { %861 = shalt.err (!%p858_p11)
}
 0x1e9   : > { %s862_s27 = scalar_lea.hbm %s1177_s3, 2048  ;;  %s866_s5 = scalar_lea.hbm %s1232_s2, 4096 }
 0x1ea   : > { %p863_p1 = scmp.ne.s32.totalorder %s1177_s3, %s862_s27  ;;  %p867_p5 = scmp.lt.u32.totalorder %s1177_s3, %s1232_s2 }
 0x1eb   : > { %p868_p4 = scmp.lt.u32.totalorder %s866_s5, %s862_s27  ;;  %p870_p0 = scmp.lt.u32.totalorder %s862_s27, %s1177_s3 }
 0x1ec   : > { %p864_p6 = pnand %p863_p1, %p1243_p3 }
 0x1ed   : > { %p869_p8 = por %p868_p4, %p867_p5 }
 0x1ee   : > { %p865_p2 = pneg %p864_p6 }
 0x1ef   : > { %p871_p12 = por %p870_p0, %p869_p8 }
 0x1f1   : > { %p872_p13 = pnand %p871_p12, %p865_p2 }
 0x1f3   : > { %875 = shalt.err (!%p872_p13)
}
 0x1f4   : > { %s941_s21 = smov 128   ;;  %s942_s8 = smov 8  }
 0x1f5   : > { %720 = dma.vmem_to_hbm [thread:$0]  (%p1243_p3), %s1179_s19, 2048, %s1177_s3, %s483_s15, %s941_s21, %s941_s21, %s942_s8  }
 0x1f6 PF: > { %s514_s18 = sand.u32 1, %s914_s9   ;;  %p1244_p7 = scmp.ne.s32.totalorder %s1238_s24, 0 }
 0x1f7   : > { %p1245_p10 = scmp.ge.s32.totalorder %s934_s14, 2  ;;  %s515_s28 = scalar_lea.sflag [#allocation4], %s514_s18 }
 0x1f9   : > { %p730_p9 = pnand %p1245_p10, %p1244_p7 }
 0x1fb   : > { %909 = dma.done.wait (!%p730_p9), %s515_s28, 2048  }
 0x1fc   : > { %911 = vsyncadd (!%p730_p9), %s515_s28, 4294965248  ;;  %s21_s14 = sadd.s32 1, %s934_s14   ;;  %s1246_s9 = smov %s918_s10 }
 0x1fd   : > { %p18_p11 = scmp.ge.s32.totalorder %s21_s14, 4   ;;  %s1247_s10 = smov %s922_s11 }
 0x1fe   : > { %s1248_s11 = smov %s1014_s23  ;;  %s1249_s12 = smov %s930_s13 }
 0x1ff   : > { %s1250_s13 = smov %s1252_s17  ;;  %20 = sbr.rel (!%p18_p11) target bundleno = 8 (0x8), region = 86 }
 0x206   :  { %520 = vsyncpa [#allocation3], 1 }
 0x207   :  { %522 = vsyncpa [#allocation3 + $0x1], 1 }
 0x208   :  { %523 = vsyncpa [#allocation6], 1 }
 0x209   :  { %525 = vsyncpa [#allocation6 + $0x1], 1 }
 0x20a   :  { %526 = vsyncpa [#allocation4], 1 }
 0x20b   :  { %528 = vsyncpa [#allocation4 + $0x1], 1 }

</bundles_post_ra>
